<compile_context>
chip_gen: v7x
topology: tpu7x:2x2x1
jax: 0.10.0
libtpu: 0.0.40
codegen_flags: <defaults>
</compile_context>

<pallas_src>
import jax
import jax.numpy as jnp
from jax.experimental import pallas as pl
from jax.experimental.pallas import tpu as pltpu


def _round_down_128(n: int) -> int:
    return (n // 128) * 128


def _round_up_128(n: int) -> int:
    return ((n + 127) // 128) * 128


def _make_ln_channel_kernel(eps: float):
    def kernel(x_ref, w_ref, b_ref, o_ref):
        # x_ref block: (TB, C, T); w_ref / b_ref block: (1, C, 1)
        x = x_ref[...].astype(jnp.float32)
        c = x_ref.shape[1]
        inv_c = 1.0 / float(c)

        # Single pass over the block: sum and sum-of-squares along channels.
        s1 = jnp.sum(x, axis=1, keepdims=True)          # (TB, 1, T)
        s2 = jnp.sum(x * x, axis=1, keepdims=True)      # (TB, 1, T)
        u = s1 * inv_c                                  # mean over C
        # Clamp: E[x^2] - E[x]^2 can cancel slightly negative in f32.
        var = jnp.maximum(s2 * inv_c - u * u, 0.0)
        inv = jax.lax.rsqrt(var + eps)                  # EUP slot

        w = w_ref[...].astype(jnp.float32)              # (1, C, 1) broadcast
        b = b_ref[...].astype(jnp.float32)
        o_ref[...] = (w * ((x - u) * inv) + b).astype(o_ref.dtype)

    return kernel


def layer_norm_channel(
    x,
    weight,
    bias,
    eps: float = 1e-5,
    target_block_bytes: int = 2 * 1024 * 1024,
    vmem_limit_bytes: int = 48 * 1024 * 1024,
):
    """x: [B, C, H, W]; weight, bias: [C]. Returns [B, C, H, W].

    Tiling policy (byte-targeted):
      * If a full-HW slab (1, C, HW) fits `target_block_bytes`, process TB
        batch elements per grid step with a fully contiguous block
        (TB, C, HW); TB is chosen so the block is ~target_block_bytes while
        keeping at least two grid steps when B >= 2.
      * Otherwise tile HW with a 128-aligned lane tile sized to
        ~target_block_bytes; the trailing partial tile is handled by the cdiv
        grid + masked partial-block writeback.
    """
    B, C, H, W = x.shape
    HW = H * W
    itemsize = jnp.dtype(x.dtype).itemsize
    col_bytes = C * itemsize                 # one (1, C, 1) lane column
    full_hw_bytes = col_bytes * HW           # one (1, C, HW) slab

    if full_hw_bytes > target_block_bytes and HW >= 256:
        # Byte-targeted, 128-aligned lane tile (strided DMA per tile, but each
        # tile is roofline-sized regardless of C).
        tile_hw = max(128, _round_down_128(target_block_bytes // col_bytes))
        tb = 1
    else:
        # Full-HW contiguous slab; batch several batch elements per step.
        tile_hw = HW
        tb = max(1, min(B, target_block_bytes // max(full_hw_bytes, 1)))
        if B >= 2:
            # Keep at least two grid steps so both v7x TensorCores get work.
            tb = min(tb, max(1, B // 2))
        # Keep full blocks along the batch axis.
        while tb > 1 and B % tb != 0:
            tb -= 1

    # If we still ended up with a single grid step (B == 1 and one HW tile),
    # split HW in two when the lane width allows it.
    if pl.cdiv(B, tb) * pl.cdiv(HW, tile_hw) < 2 and HW >= 256:
        tile_hw = _round_up_128(pl.cdiv(HW, 2))

    grid = (pl.cdiv(B, tb), pl.cdiv(HW, tile_hw))

    x3 = x.reshape(B, C, HW)
    w3 = weight.reshape(1, C, 1)
    b3 = bias.reshape(1, C, 1)

    out = pl.pallas_call(
        _make_ln_channel_kernel(eps),
        out_shape=jax.ShapeDtypeStruct((B, C, HW), x.dtype),
        grid_spec=pltpu.PrefetchScalarGridSpec(
            num_scalar_prefetch=0,
            grid=grid,
            in_specs=[
                pl.BlockSpec((tb, C, tile_hw), lambda bi, ti: (bi, 0, ti)),  # x
                pl.BlockSpec((1, C, 1), lambda bi, ti: (0, 0, 0)),           # weight
                pl.BlockSpec((1, C, 1), lambda bi, ti: (0, 0, 0)),           # bias
            ],
            out_specs=pl.BlockSpec((tb, C, tile_hw), lambda bi, ti: (bi, 0, ti)),
        ),
        compiler_params=pltpu.CompilerParams(
            dimension_semantics=("parallel", "parallel"),
            vmem_limit_bytes=vmem_limit_bytes,
        ),
    )(x3, w3, b3)

    return out.reshape(B, C, H, W)


def layer_norm_channel_ref(x, weight, bias, eps: float = 1e-5):
    """Pure-JAX reference mirroring the PyTorch forward exactly."""
    u = jnp.mean(x, axis=1, keepdims=True)
    s = jnp.mean((x - u) ** 2, axis=1, keepdims=True)
    xn = (x - u) / jnp.sqrt(s + eps)
    return weight[None, :, None, None] * xn + bias[None, :, None, None]


if __name__ == "__main__":
    key = jax.random.PRNGKey(0)

    # --- Case 1: nominal small shape (full-HW contiguous blocks, grid (2,1)). ---
    kx, kw, kb = jax.random.split(key, 3)
    B, C, H, W = 2, 4, 16, 16
    x = jax.random.normal(kx, (B, C, H, W), dtype=jnp.float32)
    weight = 1.0 + 0.1 * jax.random.normal(kw, (C,), dtype=jnp.float32)
    bias = 0.1 * jax.random.normal(kb, (C,), dtype=jnp.float32)

    out = layer_norm_channel(x, weight, bias, eps=1e-5)
    out = jax.block_until_ready(out)
    ref = layer_norm_channel_ref(x, weight, bias, eps=1e-5)
    assert out.shape == (B, C, H, W)
    assert jnp.allclose(out, ref, atol=2e-5, rtol=2e-5)

    # --- Case 2: tiled-HW path with a partial remainder tile (tiny byte budget
    # forces tiling: HW = 576 -> lane tiles 256, 256, 64-masked). ---
    kx2, kw2, kb2 = jax.random.split(jax.random.PRNGKey(0), 3)
    B2, C2, H2, W2 = 2, 8, 24, 24
    x2 = jax.random.normal(kx2, (B2, C2, H2, W2), dtype=jnp.float32)
    w2 = 1.0 + 0.1 * jax.random.normal(kw2, (C2,), dtype=jnp.float32)
    b2 = 0.1 * jax.random.normal(kb2, (C2,), dtype=jnp.float32)

    out2 = layer_norm_channel(x2, w2, b2, eps=1e-5, target_block_bytes=8192)
    out2 = jax.block_until_ready(out2)
    ref2 = layer_norm_channel_ref(x2, w2, b2, eps=1e-5)
    assert out2.shape == (B2, C2, H2, W2)
    assert jnp.allclose(out2, ref2, atol=2e-5, rtol=2e-5)

    # --- Case 3: late-stage PoolFormer shape (HW = 7*7 = 49 < 128): batched
    # full-HW blocks, TB = 2 batch elements per step, grid (2, 1). ---
    kx3, kw3, kb3 = jax.random.split(jax.random.PRNGKey(0), 3)
    B3, C3, H3, W3 = 4, 16, 7, 7
    x3 = jax.random.normal(kx3, (B3, C3, H3, W3), dtype=jnp.float32)
    w3 = 1.0 + 0.1 * jax.random.normal(kw3, (C3,), dtype=jnp.float32)
    b3 = 0.1 * jax.random.normal(kb3, (C3,), dtype=jnp.float32)

    out3 = layer_norm_channel(x3, w3, b3, eps=1e-5)
    out3 = jax.block_until_ready(out3)
    ref3 = layer_norm_channel_ref(x3, w3, b3, eps=1e-5)
    assert out3.shape == (B3, C3, H3, W3)
    assert jnp.allclose(out3, ref3, atol=2e-5, rtol=2e-5)

    print("KERNEL_OK")
</pallas_src>

<mosaic_0001>
module attributes {stable_mosaic.version = 11 : i64} {
  func.func @kernel(%arg0: i32, %arg1: i32, %arg2: memref<1x4x256xf32, #tpu.memory_space<vmem>>, %arg3: memref<1x4x1xf32, #tpu.memory_space<vmem>>, %arg4: memref<1x4x1xf32, #tpu.memory_space<vmem>>, %arg5: memref<1x4x256xf32, #tpu.memory_space<vmem>>) attributes {dimension_semantics = [#tpu.dimension_semantics<parallel>, #tpu.dimension_semantics<parallel>], iteration_bounds = array<i64: 2, 1>, scalar_prefetch = 0 : i64, scratch_operands = 0 : i64, tpu.core_type = #tpu.core_type<tc>, window_params = [{transform_indices = @transform_0, window_bounds = array<i64: 1, 4, 256>}, {pipeline_mode = #tpu.pipeline_mode<synchronous>, transform_indices = @transform_1, window_bounds = array<i64: 1, 4, 1>}, {pipeline_mode = #tpu.pipeline_mode<synchronous>, transform_indices = @transform_2, window_bounds = array<i64: 1, 4, 1>}, {transform_indices = @transform_3, window_bounds = array<i64: 1, 4, 256>}]} {
    %c0 = arith.constant 0 : index
    %c0_0 = arith.constant 0 : index
    %c0_1 = arith.constant 0 : index
    %0 = vector.load %arg2[%c0, %c0_0, %c0_1] : memref<1x4x256xf32, #tpu.memory_space<vmem>>, vector<1x4x256xf32>
    %cst = arith.constant dense<0.000000e+00> : vector<1x256xf32>
    %1 = vector.multi_reduction <add>, %0, %cst [1] : vector<1x4x256xf32> to vector<1x256xf32>
    %2 = vector.shape_cast %1 : vector<1x256xf32> to vector<1x1x256xf32>
    %3 = arith.mulf %0, %0 : vector<1x4x256xf32>
    %cst_2 = arith.constant dense<0.000000e+00> : vector<1x256xf32>
    %4 = vector.multi_reduction <add>, %3, %cst_2 [1] : vector<1x4x256xf32> to vector<1x256xf32>
    %5 = vector.shape_cast %4 : vector<1x256xf32> to vector<1x1x256xf32>
    %cst_3 = arith.constant 2.500000e-01 : f32
    %6 = vector.broadcast %cst_3 : f32 to vector<1x1x256xf32>
    %7 = arith.mulf %2, %6 : vector<1x1x256xf32>
    %cst_4 = arith.constant 2.500000e-01 : f32
    %8 = vector.broadcast %cst_4 : f32 to vector<1x1x256xf32>
    %9 = arith.mulf %5, %8 : vector<1x1x256xf32>
    %10 = arith.mulf %7, %7 : vector<1x1x256xf32>
    %11 = arith.subf %9, %10 : vector<1x1x256xf32>
    %cst_5 = arith.constant 0.000000e+00 : f32
    %12 = vector.broadcast %cst_5 : f32 to vector<1x1x256xf32>
    %13 = arith.maximumf %11, %12 : vector<1x1x256xf32>
    %cst_6 = arith.constant 9.99999974E-6 : f32
    %14 = vector.broadcast %cst_6 : f32 to vector<1x1x256xf32>
    %15 = arith.addf %13, %14 : vector<1x1x256xf32>
    %16 = math.rsqrt %15 : vector<1x1x256xf32>
    %c0_7 = arith.constant 0 : index
    %c0_8 = arith.constant 0 : index
    %c0_9 = arith.constant 0 : index
    %17 = vector.load %arg3[%c0_7, %c0_8, %c0_9] : memref<1x4x1xf32, #tpu.memory_space<vmem>>, vector<1x4x1xf32>
    %c0_10 = arith.constant 0 : index
    %c0_11 = arith.constant 0 : index
    %c0_12 = arith.constant 0 : index
    %18 = vector.load %arg4[%c0_10, %c0_11, %c0_12] : memref<1x4x1xf32, #tpu.memory_space<vmem>>, vector<1x4x1xf32>
    %19 = vector.broadcast %7 : vector<1x1x256xf32> to vector<1x4x256xf32>
    %20 = arith.subf %0, %19 : vector<1x4x256xf32>
    %21 = vector.broadcast %16 : vector<1x1x256xf32> to vector<1x4x256xf32>
    %22 = arith.mulf %20, %21 : vector<1x4x256xf32>
    %23 = vector.broadcast %17 : vector<1x4x1xf32> to vector<1x4x256xf32>
    %24 = arith.mulf %23, %22 : vector<1x4x256xf32>
    %25 = vector.broadcast %18 : vector<1x4x1xf32> to vector<1x4x256xf32>
    %26 = arith.addf %24, %25 : vector<1x4x256xf32>
    %c0_13 = arith.constant 0 : index
    %c0_14 = arith.constant 0 : index
    %c0_15 = arith.constant 0 : index
    %27 = vector.load %arg5[%c0_13, %c0_14, %c0_15] : memref<1x4x256xf32, #tpu.memory_space<vmem>>, vector<1x4x256xf32>
    tpu.vector_store %arg5[%c0_13, %c0_14, %c0_15], %26 {strides = array<i32>} : memref<1x4x256xf32, #tpu.memory_space<vmem>>, vector<1x4x256xf32>,
    return
  }
  func.func @transform_0(%arg0: i32, %arg1: i32) -> (i32, i32, i32) {
    %c0_i32 = arith.constant 0 : i32
    %c0_i32_0 = arith.constant 0 : i32
    return %arg0, %c0_i32, %arg1 : i32, i32, i32
  }
  func.func @transform_1(%arg0: i32, %arg1: i32) -> (i32, i32, i32) {
    %c0_i32 = arith.constant 0 : i32
    %c0_i32_0 = arith.constant 0 : i32
    %c0_i32_1 = arith.constant 0 : i32
    %c0_i32_2 = arith.constant 0 : i32
    return %c0_i32, %c0_i32_0, %c0_i32_1 : i32, i32, i32
  }
  func.func @transform_2(%arg0: i32, %arg1: i32) -> (i32, i32, i32) {
    %c0_i32 = arith.constant 0 : i32
    %c0_i32_0 = arith.constant 0 : i32
    %c0_i32_1 = arith.constant 0 : i32
    %c0_i32_2 = arith.constant 0 : i32
    return %c0_i32, %c0_i32_0, %c0_i32_1 : i32, i32, i32
  }
  func.func @transform_3(%arg0: i32, %arg1: i32) -> (i32, i32, i32) {
    %c0_i32 = arith.constant 0 : i32
    %c0_i32_0 = arith.constant 0 : i32
    return %arg0, %c0_i32, %arg1 : i32, i32, i32
  }
}

</mosaic_0001>

<bundles_post_ra>
// kernel: tpu_custom_call.1
= control target key start
LH: loop header
LB: loop body
LE: loop exit
PB: predicated region body
PF: predicated region fallthrough
CT: control target
= control target key end

     0   :  { %8 = vsyncpa [#allocation3], 0  ;;  %s798_s0 = inlined_call_operand.hbm [shape: f32[2,4,256], index: 0, kind: input, shape index: {}]   ;;  %s799_s1 = inlined_call_operand.vmem [shape: f32[1,4,1], index: 1, kind: input, shape index: {}]   ;;  %s800_s2 = inlined_call_operand.vmem [shape: f32[1,4,1], index: 2, kind: input, shape index: {}]   ;;  %s801_s3 = inlined_call_operand.hbm [shape: f32[2,4,256], index: 3, kind: output, shape index: {}]  }
   0x1   :  { %10 = vsyncpa [#allocation3 + $0x1], 0 }
   0x2   :  { %11 = vsyncpa [#allocation4], 0 }
   0x3   :  { %13 = vsyncpa [#allocation4 + $0x1], 0  ;;  %s616_s12 = smov 0   ;;  %s618_s13 = smov 0  }
   0x4   :  { %s620_s14 = smov 0   ;;  %s622_s15 = smov 0  }
   0x5   :  { %s624_s16 = smov 0   ;;  %s626_s17 = smov 0  }
   0x6 LB: > { %s393_s18 = sadd.s32 4294967295, %s591_s17   ;;  %s394_s19 = sadd.s32 4294967294, %s591_s17   ;;  %s591_s17 = sphi %s626_s17, %s19_s17   ;;  %s587_s16 = sphi %s624_s16, %s817_s16   ;;  %s583_s15 = sphi %s622_s15, %s816_s15   ;;  %s579_s14 = sphi %s620_s14, %s815_s14   ;;  %s575_s13 = sphi %s618_s13, %s814_s13   ;;  %s571_s12 = sphi %s616_s12, %s813_s12  }
   0x7   : > { %s31_s20 = sadd.s32 1, %s587_s16  ;;  %s40_s21 = sadd.s32 1, %s579_s14 }
   0x8   : > { %p33_p0 = scmp.ge.s32.totalorder %s31_s20, 2  ;;  %p47_p1 = scmp.ne.s32.totalorder %s579_s14, %s575_s13 }
   0x9   : > { %p48_p2 = scmp.eq.s32.totalorder %s591_s17, 0  ;;  %p53_p3 = scmp.ne.s32.totalorder %s575_s13, %s571_s12 }
   0xa   : > { %s819_s20 = smov (%p33_p0, %s31_s20), 0  ;;  %p54_p5 = scmp.eq.s32.totalorder %s393_s18, 0 }
   0xb   : > { %p657_p4 = por %p48_p2, %p47_p1  ;;  %s35_s23 = ssub.s32 %s587_s16, %s819_s20 }
   0xc   : > { %p121_p6 = scmp.eq.s32.totalorder %s393_s18, 1  ;;  %p38_p7 = scmp.eq.s32.totalorder %s35_s23, 0 }
   0xd   : > { %p663_p8 = por %p54_p5, %p53_p3  ;;  %p127_p10 = scmp.eq.s32.totalorder %s394_s19, 1 }
   0xe   : > { %p667_p9 = por %p121_p6, %p47_p1  ;;  %p422_p13 = scmp.lt.s32.totalorder %s591_s17, 2 }
   0xf   : > { %s672_s26 = scalar_select %p38_p7, %s579_s14, %s40_s21  }
  0x10   : > { %s805_s25 = scalar_select %p667_p9, 1, 0 }
  0x11   : > { %p674_p11 = por %p127_p10, %p53_p3  ;;  %s153_s28 = sand.u32 1, %s579_s14  }
  0x12   : > { %s397_s29 = sshll.u32 %s153_s28, 3  ;;  %s408_s30 = sshll.u32 %s587_s16, 7 }
  0x13   : > { %s806_s27 = scalar_select %p674_p11, 1, 0 }
  0x14   : > { %s685_s6 = scalar_lea.hbm %s798_s0, %s408_s30  ;;  %s157_s7 = scalar_lea.vmem [#allocation2], %s397_s29 }
  0x15   : > { %s167_s8 = sshll.u32 %s157_s7, 4  ;;  %p691_p0 = pnand %p422_p13, %p657_p4  ;;  %s687_s8 = int_to_ptr.vmem [resolvable:$true] %s167_s8 }
  0x16   : > { %s154_s10 = scalar_lea.sflag [#allocation3], %s153_s28  ;;  %s479_s11 = scalar_lea.hbm %s685_s6, 128 }
  0x17   : > { %p480_p3 = scmp.ne.s32.totalorder %s685_s6, %s479_s11  ;;  %p481_p5 = pneg %p691_p0 }
  0x18   : > { %s484_s21 = scalar_lea.hbm %s798_s0, 256  ;;  %p485_p4 = scmp.lt.u32.totalorder %s685_s6, %s798_s0 }
  0x19   : > { %p482_p6 = pnand %p481_p5, %p480_p3  ;;  %p486_p10 = scmp.lt.u32.totalorder %s484_s21, %s479_s11 }
  0x1a   : > { %p488_p12 = scmp.lt.u32.totalorder %s479_s11, %s685_s6 }
  0x1b   : > { %p483_p7 = pneg %p482_p6  ;;  %p487_p13 = por %p486_p10, %p485_p4 }
  0x1d   : > { %p489_p1 = por %p488_p12, %p487_p13 }
  0x1f   : > { %p490_p2 = pnand %p489_p1, %p483_p7 }
  0x21   : > { %493 = shalt.err (!%p490_p2)
}
  0x22   : > { %s494_s28 = scalar_lea.vmem %s687_s8, 128  ;;  %s593_s29 = smov [#allocation2]  }
  0x23   : > { %p495_p3 = scmp.ne.s32.totalorder %s687_s8, %s494_s28  ;;  %s499_s30 = sshll.u32 %s593_s29, 4  ;;  %s500_s30 = int_to_ptr.vmem [resolvable:$false] %s499_s30 }
  0x24   : > { %s501_s4 = scalar_lea.vmem %s500_s30, 256  ;;  %p502_p9 = scmp.lt.s32.totalorder %s687_s8, %s500_s30 }
  0x25   : > { %p497_p6 = pnand %p495_p3, %p481_p5  ;;  %p503_p4 = scmp.lt.s32.totalorder %s501_s4, %s494_s28 }
  0x27   : > { %p498_p11 = pneg %p497_p6  ;;  %p504_p10 = por %p503_p4, %p502_p9 }
  0x29   : > { %p505_p12 = pnand %p504_p10, %p498_p11 }
  0x2b   : > { %508 = shalt.err (!%p505_p12)
}
  0x2c   : > { %417 = dma.hbm_to_vmem [thread:$0]  (!%p691_p0), %s685_s6, 128, %s687_s8, %s154_s10  }
  0x2d   : > { %p808_p1 = scmp.lt.s32.totalorder %s591_s17, 3  ;;  %p809_p2 = scmp.ge.s32.totalorder %s591_s17, 1 }
  0x2f   : > { %p173_p5 = pnand %p809_p2, %p808_p1 }
  0x30   : > { %s727_s5 = sand.u32 (!%p173_p5), 1, %s575_s13  }
  0x31   : > { %176 = sbr.rel (%p173_p5) target bundleno = 209 (0xd1), region = 32  ;;  %s401_s7 = sshll.u32 (!%p173_p5), %s727_s5, 3 }
  0x32   : > { %s179_s11 = scalar_lea.sflag (!%p173_p5), [#allocation3], %s727_s5  ;;  %s182_s9 = scalar_lea.vmem (!%p173_p5), [#allocation2], %s401_s7 }
  0x38   : > { %562 = dma.done.wait (%p663_p8), %s179_s11, 128  }
  0x39   : > { %564 = vsyncadd (%p663_p8), %s179_s11, 4294967168  ;;  %v594_v0 = vmov 0   ;;  %v258_v1 = vld [vmem:[%s799_s1] sm:$0xf]  ;;  %vm211_vm0 = vcmask 1043456   ;;  %s409_s24 = sshll.u32 %s583_s15, 7 }
  0x3a   : > { %473 = vset.pattern.permute.xlu0 %v594_v0  ;;  %v259_v2 = vld [vmem:[%s800_s2] sm:$0xf]  ;;  %s204_s19 = scalar_lea.vmem [#allocation5], %s401_s7  ;;  %s749_s28 = scalar_lea.hbm %s801_s3, %s409_s24 }
  0x3b   : > { %272 = vperm.xlu0 %473, %v258_v1   ;;  %v207_v3 = vld [vmem:[%s182_s9] sm:$0xff]  ;;  %s309_s21 = sshll.u32 %s204_s19, 4  ;;  %s293_s29 = scalar_lea.sflag [#allocation4], %s727_s5  ;;  %s751_s21 = int_to_ptr.vmem [resolvable:$true] %s309_s21 }
  0x3c   : > { %v209_v4 = vcombine.high %v207_v3, %v207_v3  ;;  %v226_v5 = vmul.f32 %v207_v3, %v207_v3  ;;  %v212_v6 = vsel %vm211_vm0, %v207_v3, 0.0  ;;  %s509_s30 = scalar_lea.vmem %s751_s21, 128  ;;  %p810_p9 = scmp.ne.s32.totalorder %s805_s25, 0 }
  0x3d   : > { %v213_v9 = vrot.slane %v212_v6, 4  ;;  %p510_p8 = scmp.ne.s32.totalorder %s751_s21, %s509_s30  ;;  %s595_s15 = smov [#allocation5]  }
  0x3e   : > { %v219_v7 = vsel %vm211_vm0, %v209_v4, 0.0  ;;  %v228_v8 = vcombine.high %v226_v5, %v226_v5  ;;  %v230_v11 = vsel %vm211_vm0, %v226_v5, 0.0  ;;  %s513_s4 = sshll.u32 %s595_s15, 4  ;;  %s514_s4 = int_to_ptr.vmem [resolvable:$false] %s513_s4 }
  0x3f   : > { %282 = vperm.xlu0 %473, %v259_v2   ;;  %v220_v10 = vrot.slane %v219_v7, 4  ;;  %v214_v13 = vadd.f32 %v213_v9, %v212_v6  ;;  %v231_v14 = vrot.slane %v230_v11, 4  ;;  %p511_p11 = pnand %p510_p8, %p810_p9  ;;  %s515_s7 = scalar_lea.vmem %s514_s4, 256 }
  0x40   : > { %v237_v12 = vsel %vm211_vm0, %v228_v8, 0.0  ;;  %p516_p7 = scmp.lt.s32.totalorder %s751_s21, %s514_s4  ;;  %p517_p13 = scmp.lt.s32.totalorder %s515_s7, %s509_s30 }
  0x41   : > { %v221_v15 = vadd.f32 %v220_v10, %v219_v7  ;;  %v238_v16 = vrot.slane %v237_v12, 4  ;;  %v215_v17 = vrot.slane %v214_v13, 2  ;;  %v232_v18 = vadd.f32 %v231_v14, %v230_v11  ;;  %p512_p0 = pneg %p511_p11 }
  0x42   : > { %p518_p3 = por %p517_p13, %p516_p7 }
  0x43   : > { %v222_v19 = vrot.slane %v221_v15, 2  ;;  %v239_v20 = vadd.f32 %v238_v16, %v237_v12  ;;  %v216_v21 = vadd.f32 %v215_v17, %v214_v13  ;;  %v233_v22 = vrot.slane %v232_v18, 2 }
  0x44   : > { %p519_p6 = pnand %p518_p3, %p512_p0 }
  0x45   : > { %v223_v23 = vadd.f32 %v222_v19, %v221_v15  ;;  %v240_v24 = vrot.slane %v239_v20, 2  ;;  %v217_v25 = vrot.slane %v216_v21, 1  ;;  %v234_v26 = vadd.f32 %v233_v22, %v232_v18 }
  0x47   : > { %v224_v27 = vrot.slane %v223_v23, 1  ;;  %v241_v28 = vadd.f32 %v240_v24, %v239_v20  ;;  %v218_v29 = vadd.f32 %v217_v25, %v216_v21  ;;  %v235_v30 = vrot.slane %v234_v26, 1 }
  0x49   : > { %v225_v31 = vadd.f32 %v224_v27, %v223_v23  ;;  %v242_v32 = vrot.slane %v241_v28, 1  ;;  %v236_v33 = vadd.f32 %v235_v30, %v234_v26  ;;  %v244_v34 = vmul.f32 0.25, %v218_v29 }
  0x4b   : > { %v243_v35 = vadd.f32 %v242_v32, %v241_v28  ;;  %v245_v36 = vmul.f32 0.25, %v225_v31  ;;  %v246_v37 = vmul.f32 0.25, %v236_v33  ;;  %v248_v38 = vmul.f32 %v244_v34, %v244_v34 }
  0x4d   : > { %v247_v39 = vmul.f32 0.25, %v243_v35  ;;  %v249_v40 = vmul.f32 %v245_v36, %v245_v36  ;;  %v250_v41 = vsub.f32 %v246_v37, %v248_v38  ;;  %v262_v48 = vcombine.low %v244_v34, %v245_v36 }
  0x4f   : > { %v251_v42 = vsub.f32 %v247_v39, %v249_v40  ;;  %v252_v43 = vmax.f32 %v250_v41, 0.0  ;;  %v264_v50 = vsub.f32 %v207_v3, %v262_v48 }
  0x51   : > { %v253_v44 = vmax.f32 %v251_v42, 0.0  ;;  %v254_v45 = vadd.f32 1e-05, %v252_v43 }
  0x53   : > { %v255_v46 = vadd.f32 1e-05, %v253_v44  ;;  %475 = vrsqrt.f32 %v254_v45 }
  0x55   : > { %477 = vrsqrt.f32 %v255_v46 }
  0x5d   : > { %v476_v47 = vpop.eup %475 }
  0x5f   : > { %v478_v49 = vpop.eup %477 }
  0x60   : > { %v267_v51 = vcombine.low %v476_v47, %v478_v49 }
  0x62   : > { %v269_v52 = vmul.f32 %v267_v51, %v264_v50 }
  0x64   : > { %v276_v53 = vcombine.high %v269_v52, %v269_v52 }
  0xba   : > { %v273_v54 = vpop.permute.xlu0 %272 }
  0xbb   : > { %v278_v55 = vmul.f32 %v273_v54, %v269_v52  ;;  %v279_v56 = vmul.f32 %v276_v53, %v273_v54 }
  0xbe   : > { %v283_v57 = vpop.permute.xlu0 %282 }
  0xbf   : > { %v285_v58 = vadd.f32 %v283_v57, %v278_v55  ;;  %v286_v59 = vadd.f32 %v283_v57, %v279_v56 }
  0xc1   : > { %v289_v60 = vcombine.low %v285_v58, %v286_v59 }
  0xc3   : > { %291 = vst [vmem:[%s204_s19] sm:$0xff] %v289_v60 }
  0xc4   : > { %522 = shalt.err (!%p519_p6)
}
  0xc5   : > { %s523_s5 = scalar_lea.hbm %s749_s28, 128  ;;  %s527_s6 = scalar_lea.hbm %s801_s3, 256 }
  0xc6   : > { %p524_p4 = scmp.ne.s32.totalorder %s749_s28, %s523_s5  ;;  %p528_p1 = scmp.lt.u32.totalorder %s749_s28, %s801_s3 }
  0xc7   : > { %p529_p2 = scmp.lt.u32.totalorder %s527_s6, %s523_s5  ;;  %p531_p8 = scmp.lt.u32.totalorder %s523_s5, %s749_s28 }
  0xc8   : > { %p525_p10 = pnand %p524_p4, %p810_p9 }
  0xc9   : > { %p530_p5 = por %p529_p2, %p528_p1 }
  0xca   : > { %p526_p12 = pneg %p525_p10 }
  0xcb   : > { %p532_p11 = por %p531_p8, %p530_p5 }
  0xcd   : > { %p533_p0 = pnand %p532_p11, %p526_p12 }
  0xcf   : > { %536 = shalt.err (!%p533_p0)
}
  0xd0   : > { %412 = dma.vmem_to_hbm [thread:$0]  (%p810_p9), %s751_s21, 128, %s749_s28, %s293_s29  }
  0xd1 PF: > { %s321_s18 = sand.u32 1, %s571_s12   ;;  %p811_p7 = scmp.ne.s32.totalorder %s806_s27, 0 }
  0xd2   : > { %p812_p13 = scmp.ge.s32.totalorder %s591_s17, 2  ;;  %s322_s24 = scalar_lea.sflag [#allocation4], %s321_s18 }
  0xd4   : > { %p419_p3 = pnand %p812_p13, %p811_p7 }
  0xd6   : > { %566 = dma.done.wait (!%p419_p3), %s322_s24, 128  }
  0xd7   : > { %568 = vsyncadd (!%p419_p3), %s322_s24, 4294967168  ;;  %s19_s17 = sadd.s32 1, %s591_s17   ;;  %s813_s12 = smov %s575_s13 }
  0xd8   : > { %p16_p6 = scmp.ge.s32.totalorder %s19_s17, 4   ;;  %s814_s13 = smov %s579_s14 }
  0xd9   : > { %s815_s14 = smov %s672_s26  ;;  %s816_s15 = smov %s587_s16 }
  0xda   : > { %s817_s16 = smov %s819_s20  ;;  %18 = sbr.rel (!%p16_p6) target bundleno = 6 (0x6), region = 77 }
  0xe1   :  { %327 = vsyncpa [#allocation3], 1 }
  0xe2   :  { %329 = vsyncpa [#allocation3 + $0x1], 1 }
  0xe3   :  { %330 = vsyncpa [#allocation4], 1 }
  0xe4   :  { %332 = vsyncpa [#allocation4 + $0x1], 1 }

</bundles_post_ra>
